<compile_context>
chip_gen: v7x
topology: tpu7x:2x2x1
jax: 0.10.0
libtpu: 0.0.40
codegen_flags: <defaults>
</compile_context>

<pallas_src>
import functools

import jax
import jax.numpy as jnp
import numpy as np
from jax.experimental import pallas as pl
from jax.experimental.pallas import tpu as pltpu


def _round_up(v, m):
    return (v + m - 1) // m * m


# ----------------------------------------------------------------------------
# Kernel 1: blocked grad-norm reduction: sqrt(mean(x^2)) over the whole batch.
# Input is reshaped lane-dense to (rows, 128); grid reduces over row chunks.
# ----------------------------------------------------------------------------
def _gradnorm_kernel(x_ref, o_ref, acc_ref, *, count):
    i = pl.program_id(0)

    @pl.when(i == 0)
    def _():
        acc_ref[0, 0] = jnp.float32(0.0)

    v = x_ref[...]
    acc_ref[0, 0] += jnp.sum(v * v)

    @pl.when(i == pl.num_programs(0) - 1)
    def _():
        o_ref[0, 0] = jnp.sqrt(acc_ref[0, 0] / count)


def _grad_norm(x_flat, count, *, max_block_rows=512):
    t = x_flat.shape[0]
    rows = max(8, _round_up(-(-t // 128), 8))
    block_rows = min(max_block_rows, rows)
    rows = _round_up(rows, block_rows)
    xp = jnp.pad(x_flat, (0, rows * 128 - t)).reshape(rows, 128)
    grid = rows // block_rows
    return pl.pallas_call(
        functools.partial(_gradnorm_kernel, count=float(count)),
        out_shape=jax.ShapeDtypeStruct((1, 1), jnp.float32),
        grid=(grid,),
        in_specs=[pl.BlockSpec((block_rows, 128), lambda i: (i, 0))],
        out_specs=pl.BlockSpec((1, 1), lambda i: (0, 0),
                               memory_space=pltpu.MemorySpace.SMEM),
        scratch_shapes=[pltpu.SMEM((1, 1), jnp.float32)],
        compiler_params=pltpu.CompilerParams(
            dimension_semantics=("arbitrary",)),
    )(xp)


# ----------------------------------------------------------------------------
# Kernel 2: fused ConvLSTM step (gate conv + LSTM pointwise + output conv).
# One grid step per batch element; the flat spatial axis is processed in
# register-sized tiles (accumulators stay small), gates are fused into one
# matmul per tap, and the zero hidden/cell path is eliminated.
# ----------------------------------------------------------------------------
def _convlstm_kernel(x_ref, mask_ref, wg_ref, bg_ref, wo_ref, bo_ref,
                     out_ref, hid_scr,
                     *, offsets, slack, tile, n_tiles, dim_hidden, cout_pad):
    chid = dim_hidden
    lp_pad = n_tiles * tile
    f32 = jnp.float32

    # Zero only the slack rings of the hidden scratch (the interior
    # [slack, slack + lp_pad) is fully rewritten below).  Done every grid step
    # so the kernel stays correct under megacore-parallel batch partitioning.
    hid_scr[pl.ds(0, slack), :] = jnp.zeros((slack, chid), f32)
    hid_scr[pl.ds(slack + lp_pad, slack), :] = jnp.zeros((slack, chid), f32)

    # Hoisted bias broadcasts (JAX does not CSE broadcast_in_dim).
    bgate = jnp.broadcast_to(bg_ref[...], (tile, 4 * chid)).astype(f32)
    bout = jnp.broadcast_to(bo_ref[...], (tile, cout_pad)).astype(f32)

    unroll = n_tiles <= 8

    # ---- Phase 1: gate conv (x half only; hidden state == 0 after
    # reset_state) + LSTM pointwise, tile-by-tile.  1/grad_norm is already
    # folded into wg, so no per-tap scaling is needed.
    def phase1(it, carry):
        row0 = pl.multiple_of(it * tile, tile)
        acc = bgate
        for t, off in enumerate(offsets):
            xs = x_ref[0, pl.ds(slack + row0 + off, tile), :]
            acc = acc + jnp.dot(xs, wg_ref[t], preferred_element_type=f32)
        in_g = jax.nn.sigmoid(acc[:, 0 * chid:1 * chid])
        # remember_gate * cell_prev == 0 (cell state is zero) -> skipped.
        out_g = jax.nn.sigmoid(acc[:, 2 * chid:3 * chid])
        cell_g = jnp.tanh(acc[:, 3 * chid:4 * chid])
        hid = out_g * jnp.tanh(in_g * cell_g)
        hid_scr[pl.ds(slack + row0, tile), :] = (
            hid * mask_ref[pl.ds(row0, tile), :])
        return carry

    jax.lax.fori_loop(0, n_tiles, phase1, 0, unroll=unroll)

    # ---- Phase 2: output conv over the masked hidden field.  The output
    # channel axis is padded to a full 128 lanes so stores are unmasked.
    def phase2(it, carry):
        row0 = pl.multiple_of(it * tile, tile)
        acc = bout
        for t, off in enumerate(offsets):
            hs = hid_scr[pl.ds(slack + row0 + off, tile), :]
            acc = acc + jnp.dot(hs, wo_ref[t], preferred_element_type=f32)
        out_ref[0, pl.ds(row0, tile), :] = acc.astype(out_ref.dtype)
        return carry

    jax.lax.fori_loop(0, n_tiles, phase2, 0, unroll=unroll)


# ----------------------------------------------------------------------------
# Wrapper (layout / parameter glue in plain JAX)
# ----------------------------------------------------------------------------
def conv_lstm_grad_forward(x, params, *, tile=128):
    """x: (N, Cin, D, H, W) float32 (torch NCDHW). Returns same shape."""
    N, Cin, D, H, W = x.shape
    Chid = params["dim_hidden"]
    Dp, Hp, Wp = D + 2, H + 2, W + 2
    Lp = Dp * Hp * Wp
    tile = min(tile, _round_up(Lp, 8))
    n_tiles = -(-Lp // tile)
    Lp_pad = n_tiles * tile
    slack = _round_up(Hp * Wp + Wp + 1, 8)
    Lext = Lp_pad + 2 * slack
    Cout_pad = max(128, _round_up(Cin, 128))       # lane-dense output stores
    offsets = tuple((i - 1) * Hp * Wp + (j - 1) * Wp + (k - 1)
                    for i in range(3) for j in range(3) for k in range(3))

    # --- kernel 1: grad-norm (lane-dense blocked reduction) ---
    gnorm = _grad_norm(x.reshape(-1), x.size)          # (1, 1)
    inv_g = 1.0 / gnorm[0, 0]

    # --- input layout glue: NCDHW -> zero-padded flat NDHWC with slack rows ---
    x_nhwc = jnp.transpose(x, (0, 2, 3, 4, 1))                       # (N,D,H,W,C)
    x_pad = jnp.pad(x_nhwc, ((0, 0), (1, 1), (1, 1), (1, 1), (0, 0)))
    x_flat = x_pad.reshape(N, Lp, Cin)
    x_ext = jnp.pad(x_flat, ((0, 0), (slack, slack + Lp_pad - Lp), (0, 0)))

    # interior mask (zeros on the padded ring + flat-layout overflow rows)
    mask = jnp.zeros((Dp, Hp, Wp), jnp.float32)
    mask = mask.at[1:D + 1, 1:H + 1, 1:W + 1].set(1.0).reshape(Lp, 1)
    mask = jnp.pad(mask, ((0, Lp_pad - Lp), (0, 0)))

    # --- weight glue: torch (O, I, kd, kh, kw) -> per-tap (27, I, O).
    # Gates stay concatenated on the output axis (one fused matmul per tap);
    # only the x half of the gate weights is needed (hidden state == 0), and
    # 1/grad_norm is folded into them (conv is linear in x, dropout is eval
    # identity).  The output-conv weights/bias are zero-padded to Cout_pad
    # lanes so the kernel's output stores are full-lane. ---
    wg_full = jnp.transpose(params["w_gates"], (2, 3, 4, 1, 0)).reshape(
        27, Cin + Chid, 4 * Chid)
    wg = wg_full[:, :Cin, :] * inv_g                                  # (27,Cin,4C)
    bg = params["b_gates"].reshape(1, 4 * Chid)
    wo = jnp.transpose(params["w_out"], (2, 3, 4, 1, 0)).reshape(27, Chid, Cin)
    wo = jnp.pad(wo, ((0, 0), (0, 0), (0, Cout_pad - Cin)))           # (27,Chid,128)
    bo = jnp.pad(params["b_out"].reshape(1, Cin),
                 ((0, 0), (0, Cout_pad - Cin)))                       # (1,128)

    kernel = functools.partial(
        _convlstm_kernel, offsets=offsets, slack=slack, tile=tile,
        n_tiles=n_tiles, dim_hidden=Chid, cout_pad=Cout_pad)

    out_flat = pl.pallas_call(
        kernel,
        out_shape=jax.ShapeDtypeStruct((N, Lp_pad, Cout_pad), jnp.float32),
        grid=(N,),
        in_specs=[
            pl.BlockSpec((1, Lext, Cin), lambda b: (b, 0, 0)),        # x_ext
            pl.BlockSpec((Lp_pad, 1), lambda b: (0, 0)),              # interior mask
            pl.BlockSpec((27, Cin, 4 * Chid), lambda b: (0, 0, 0)),   # gate W (x half, /g)
            pl.BlockSpec((1, 4 * Chid), lambda b: (0, 0)),            # gate bias
            pl.BlockSpec((27, Chid, Cout_pad), lambda b: (0, 0, 0)),  # conv_out W (padded)
            pl.BlockSpec((1, Cout_pad), lambda b: (0, 0)),            # conv_out bias (padded)
        ],
        out_specs=pl.BlockSpec((1, Lp_pad, Cout_pad), lambda b: (b, 0, 0)),
        scratch_shapes=[pltpu.VMEM((Lext, Chid), jnp.float32)],
        compiler_params=pltpu.CompilerParams(
            dimension_semantics=("parallel",)),                       # v7x: 2 TCs
    )(x_ext, mask, wg, bg, wo, bo)

    # --- output layout glue: padded-flat -> NCDHW interior ---
    out = out_flat[:, :Lp, :Cin].reshape(N, Dp, Hp, Wp, Cin)[
        :, 1:D + 1, 1:H + 1, 1:W + 1, :]
    return jnp.transpose(out, (0, 4, 1, 2, 3))


# ----------------------------------------------------------------------------
# Pure-JAX reference (mirrors the torch module) for verification
# ----------------------------------------------------------------------------
def _conv3d_ncdhw(x, w, b):
    out = jax.lax.conv_general_dilated(
        x, w, window_strides=(1, 1, 1),
        padding=((1, 1), (1, 1), (1, 1)),
        dimension_numbers=("NCDHW", "OIDHW", "NCDHW"),
        precision=jax.lax.Precision.HIGHEST)
    return out + b.reshape(1, -1, 1, 1, 1)


def reference_forward(x, params):
    N, Cin, D, H, W = x.shape
    Chid = params["dim_hidden"]
    g = jnp.sqrt(jnp.mean(x ** 2))
    xn = x / g
    hidden = jnp.zeros((N, Chid, D, H, W), jnp.float32)
    cell = jnp.zeros((N, Chid, D, H, W), jnp.float32)
    gates = _conv3d_ncdhw(jnp.concatenate([xn, hidden], axis=1),
                          params["w_gates"], params["b_gates"])
    i_g, r_g, o_g, c_g = jnp.split(gates, 4, axis=1)
    i_g, r_g, o_g = jax.nn.sigmoid(i_g), jax.nn.sigmoid(r_g), jax.nn.sigmoid(o_g)
    c_g = jnp.tanh(c_g)
    cell = r_g * cell + i_g * c_g
    hidden = o_g * jnp.tanh(cell)
    return _conv3d_ncdhw(hidden, params["w_out"], params["b_out"])


if __name__ == "__main__":
    N, Cin, Chid, D, H, W = 2, 4, 8, 8, 8, 8

    key = jax.random.PRNGKey(0)
    k1, k2, k3, k4, k5 = jax.random.split(key, 5)
    params = {
        "dim_hidden": Chid,
        # torch Conv3d weight layout: (out_ch, in_ch, kd, kh, kw)
        "w_gates": 0.1 * jax.random.normal(k1, (4 * Chid, Cin + Chid, 3, 3, 3),
                                           jnp.float32),
        "b_gates": 0.1 * jax.random.normal(k2, (4 * Chid,), jnp.float32),
        "w_out": 0.1 * jax.random.normal(k3, (Cin, Chid, 3, 3, 3), jnp.float32),
        "b_out": 0.1 * jax.random.normal(k4, (Cin,), jnp.float32),
    }
    x = jax.random.normal(k5, (N, Cin, D, H, W), jnp.float32)

    out = conv_lstm_grad_forward(x, params)
    out = jax.block_until_ready(out)

    ref = jax.block_until_ready(reference_forward(x, params))
    assert out.shape == (N, Cin, D, H, W)
    np.testing.assert_allclose(np.asarray(out), np.asarray(ref),
                               rtol=1e-2, atol=1e-2)
    print("KERNEL_OK")
</pallas_src>

<mosaic_0001>
module attributes {stable_mosaic.version = 11 : i64} {
  func.func @_gradnorm_kernel(%arg0: i32, %arg1: memref<32x128xf32, #tpu.memory_space<vmem>>, %arg2: memref<1x1xf32, #tpu.memory_space<smem>>, %arg3: memref<1x1xf32, #tpu.memory_space<smem>>) attributes {dimension_semantics = [#tpu.dimension_semantics<arbitrary>], iteration_bounds = array<i64: 1>, scalar_prefetch = 0 : i64, scratch_operands = 1 : i64, tpu.core_type = #tpu.core_type<tc>, window_params = [{transform_indices = @transform_0, window_bounds = array<i64: 32, 128>}, {transform_indices = @transform_1, window_bounds = array<i64: 1, 1>}]} {
    %c0_i32 = arith.constant 0 : i32
    %0 = arith.cmpi eq, %arg0, %c0_i32 : i32
    %1 = arith.extui %0 : i1 to i32
    %c0_i32_0 = arith.constant 0 : i32
    %2 = arith.cmpi ne, %1, %c0_i32_0 : i32
    scf.if %2 {
      %cst_8 = arith.constant 0.000000e+00 : f32
      %c0_9 = arith.constant 0 : index
      %c0_10 = arith.constant 0 : index
      %15 = memref.load %arg3[%c0_9, %c0_10] : memref<1x1xf32, #tpu.memory_space<smem>>
      memref.store %cst_8, %arg3[%c0_9, %c0_10] : memref<1x1xf32, #tpu.memory_space<smem>>
    } else {
    }
    %c0 = arith.constant 0 : index
    %c0_1 = arith.constant 0 : index
    %3 = vector.load %arg1[%c0, %c0_1] : memref<32x128xf32, #tpu.memory_space<vmem>>, vector<32x128xf32>
    %c0_2 = arith.constant 0 : index
    %c0_3 = arith.constant 0 : index
    %4 = memref.load %arg3[%c0_2, %c0_3] : memref<1x1xf32, #tpu.memory_space<smem>>
    %5 = arith.mulf %3, %3 : vector<32x128xf32>
    %6 = vector.shape_cast %5 : vector<32x128xf32> to vector<1x32x128xf32>
    %cst = arith.constant dense<0.000000e+00> : vector<1xf32>
    %7 = vector.multi_reduction <add>, %6, %cst [1, 2] : vector<1x32x128xf32> to vector<1xf32>
    %8 = vector.shape_cast %7 : vector<1xf32> to vector<1x1x1xf32>
    %9 = vector.extract %8[0, 0, 0] : f32 from vector<1x1x1xf32>
    %10 = arith.addf %4, %9 : f32
    %c0_4 = arith.constant 0 : index
    %c0_5 = arith.constant 0 : index
    %11 = memref.load %arg3[%c0_4, %c0_5] : memref<1x1xf32, #tpu.memory_space<smem>>
    memref.store %10, %arg3[%c0_4, %c0_5] : memref<1x1xf32, #tpu.memory_space<smem>>
    %c0_i32_6 = arith.constant 0 : i32
    %12 = arith.cmpi eq, %arg0, %c0_i32_6 : i32
    %13 = arith.extui %12 : i1 to i32
    %c0_i32_7 = arith.constant 0 : i32
    %14 = arith.cmpi ne, %13, %c0_i32_7 : i32
    scf.if %14 {
      %c0_8 = arith.constant 0 : index
      %c0_9 = arith.constant 0 : index
      %15 = memref.load %arg3[%c0_8, %c0_9] : memref<1x1xf32, #tpu.memory_space<smem>>
      %cst_10 = arith.constant 4.096000e+03 : f32
      %16 = arith.divf %15, %cst_10 : f32
      %17 = math.sqrt %16 : f32
      %c0_11 = arith.constant 0 : index
      %c0_12 = arith.constant 0 : index
      %18 = memref.load %arg2[%c0_11, %c0_12] : memref<1x1xf32, #tpu.memory_space<smem>>
      memref.store %17, %arg2[%c0_11, %c0_12] : memref<1x1xf32, #tpu.memory_space<smem>>
    } else {
    }
    return
  }
  func.func @transform_0(%arg0: i32) -> (i32, i32) {
    %c0_i32 = arith.constant 0 : i32
    %c0_i32_0 = arith.constant 0 : i32
    return %arg0, %c0_i32 : i32, i32
  }
  func.func @transform_1(%arg0: i32) -> (i32, i32) {
    %c0_i32 = arith.constant 0 : i32
    %c0_i32_0 = arith.constant 0 : i32
    %c0_i32_1 = arith.constant 0 : i32
    return %c0_i32, %c0_i32_0 : i32, i32
  }
}

</mosaic_0001>

<bundles_post_ra>
// kernel: tpu_custom_call.1
= control target key start
LH: loop header
LB: loop body
LE: loop exit
PB: predicated region body
PF: predicated region fallthrough
CT: control target
= control target key end

     0   :  { %6 = vsyncpa [#allocation4], 0  ;;  %s169_s0 = inlined_call_operand.hbm [shape: f32[32,128], index: 0, kind: input, shape index: {}]   ;;  %s170_s1 = inlined_call_operand.hbm [shape: f32[1,1], index: 1, kind: output, shape index: {}]  }
   0x1   :  { %7 = vsyncpa [#allocation5], 0  ;;  %s131_s6 = smov [#allocation3]   ;;  %s95_s10 = scalar_lea.hbm %s169_s0, 512 }
   0x2   :  { %s13_s7 = sshll.u32 %s131_s6, 4  ;;  %p96_p0 = scmp.ne.s32.totalorder %s169_s0, %s95_s10  ;;  %s14_s7 = int_to_ptr.vmem [resolvable:$true] %s13_s7 }
   0x3   :  { %p99_p1 = scmp.lt.u32.totalorder %s95_s10, %s169_s0 }
   0x5   :  { %p101_p2 = pnand %p99_p1, %p96_p0 }
   0x7   :  { %104 = shalt.err (!%p101_p2)
}
   0x8   :  { %s105_s15 = scalar_lea.vmem %s14_s7, 512  ;;  %p110_p4 = scmp.lt.s32.totalorder %s14_s7, %s14_s7 }
   0x9   :  { %p106_p3 = scmp.ne.s32.totalorder %s14_s7, %s105_s15  ;;  %p111_p5 = scmp.lt.s32.totalorder %s105_s15, %s105_s15 }
   0xb   :  { %p112_p6 = por %p111_p5, %p110_p4 }
   0xd   :  { %p113_p7 = pnand %p112_p6, %p106_p3 }
   0xf   :  { %116 = shalt.err (!%p113_p7)
}
  0x10   :  { %s132_s16 = smov 128   ;;  %s133_s17 = smov 8  }
  0x11   :  { %19 = dma.hbm_to_vmem [thread:$0]  %s169_s0, 512, %s14_s7, [#allocation4], %s132_s16, %s132_s16, %s133_s17  }
  0x12   :  { %127 = dma.done.wait [#allocation4], 512  }
  0x13   :  { %128 = vsyncadd [#allocation4], 4294966784  ;;  %v29_v0 = vld [vmem:[#allocation3] sm:$0xff]  ;;  %v30_v1 = vld [vmem:[#allocation3 + $0x8] sm:$0xff]  ;;  %s117_s24 = scalar_lea.hbm %s170_s1, 16 }
  0x14   :  { %v31_v2 = vld [vmem:[#allocation3 + $0x10] sm:$0xff]  ;;  %v32_v3 = vld [vmem:[#allocation3 + $0x18] sm:$0xff]  ;;  %v34_v4 = vmul.f32 %v29_v0, %v29_v0  ;;  %v35_v5 = vmul.f32 %v30_v1, %v30_v1  ;;  %p118_p8 = scmp.ne.s32.totalorder %s170_s1, %s117_s24  ;;  %p121_p9 = scmp.lt.u32.totalorder %s117_s24, %s170_s1 }
  0x15   :  { %v36_v6 = vmul.f32 %v31_v2, %v31_v2  ;;  %v37_v7 = vmul.f32 %v32_v3, %v32_v3 }
  0x16   :  { %v38_v8 = vadd.f32 %v35_v5, %v34_v4  ;;  %p123_p10 = pnand %p121_p9, %p118_p8 }
  0x18   :  { %v39_v9 = vadd.f32 %v38_v8, %v36_v6 }
  0x1a   :  { %v40_v10 = vadd.f32 %v39_v9, %v37_v7 }
  0x1c   :  { %41 = vadd.xlane.f32.xlu0 %v40_v10 }
  0xa9   :  { %v42_v11 = vpop.xlane.xlu0 %41 }
  0xaa   :  { %v43_v12 = vrot.slane %v42_v11, 4 }
  0xac   :  { %v44_v13 = vadd.f32 %v43_v12, %v42_v11 }
  0xae   :  { %v45_v14 = vrot.slane %v44_v13, 2 }
  0xb0   :  { %v46_v15 = vadd.f32 %v45_v14, %v44_v13 }
  0xb2   :  { %v47_v16 = vrot.slane %v46_v15, 1 }
  0xb4   :  { %v48_v17 = vadd.f32 %v47_v16, %v46_v15 }
  0xb6   :  { %85 = vpush %v48_v17 }
  0xe7   :  { %s86_s0 = spop %85 }
  0xe8   :  { %s59_s20 = smul.f32 0.00024414063, %s86_s0 }
  0xea   :  { %v60_v18 = vstv %s59_s20 }
  0xeb   :  { %93 = vrsqrt.f32 %v60_v18  ;;  %vm63_vm0 = vcmp.eq.f32.partialorder %v60_v18, inf  ;;  %v66_v21 = vand.u32 2147483648, %v60_v18  ;;  %vm65_vm1 = vcmp.eq.f32.partialorder %v60_v18, 0.0 }
  0xf5   :  { %v94_v19 = vpop.eup %93 }
  0xf6   :  { %v62_v20 = vmul.f32 %v94_v19, %v60_v18 }
  0xf8   :  { %v64_v22 = vsel %vm63_vm0, %v60_v18, %v62_v20 }
  0xf9   :  { %v67_v23 = vsel %vm65_vm1, %v66_v21, %v64_v22 }
  0xfa   :  { %87 = vpush %v67_v23 }
 0x12b   :  { %s88_s21 = spop %87 }
 0x12c   :  { %70 = sst [smem:[#allocation6]] %s88_s21 }
 0x12d   :  { %126 = shalt.err (!%p123_p10)
}
 0x12e   :  { %s134_s29 = smov [#allocation6]  }
 0x12f   :  { %78 = dma.smem_to_hbm %s134_s29, 16, %s170_s1, [#allocation5]  }
 0x130   :  { %129 = dma.done.wait [#allocation5], 16  }
 0x131   :  { %130 = vsyncadd [#allocation5], 4294967280 }
 0x132   :  { %82 = sfence }
 0x133   :  { %83 = vsyncpa [#allocation4], 1 }
 0x134   :  { %84 = vsyncpa [#allocation5], 1 }

</bundles_post_ra>
